<compile_context>
chip_gen: v5e
topology: v5e:2x2
jax: 0.10.0
libtpu: 0.0.40
codegen_flags: <defaults>
</compile_context>

<pallas_src>
import functools

import numpy as np
import jax
import jax.numpy as jnp
from jax.experimental import pallas as pl
from jax.experimental.pallas import tpu as pltpu


def _ceil_to(a: int, m: int) -> int:
    return -(-a // m) * m


def _bilinear_matrix(out_size: int, in_size: int) -> np.ndarray:
    """Dense (out_size, in_size) matrix reproducing torch bilinear
    interpolation (align_corners=False) along one axis."""
    i = np.arange(out_size, dtype=np.float64)
    src = (i + 0.5) * (in_size / out_size) - 0.5
    src = np.maximum(src, 0.0)           # PyTorch clamps negative source coords
    i0 = np.floor(src).astype(np.int64)
    frac = src - i0
    i0c = np.clip(i0, 0, in_size - 1)
    i1c = np.clip(i0 + 1, 0, in_size - 1)
    m = np.zeros((out_size, in_size), dtype=np.float64)
    m[np.arange(out_size), i0c] += 1.0 - frac
    m[np.arange(out_size), i1c] += frac
    return m.astype(np.float32)


@functools.lru_cache(maxsize=64)
def _interp_operators(h, hs, w, ws, hp, wp):
    """Row operator (Hp, Hs) (zero rows beyond H) and lane-padded column
    operator Ww^T (Ws, Wp) (zero columns beyond W). Built once per shape."""
    wh = np.zeros((hp, hs), np.float32)
    wh[:h] = _bilinear_matrix(h, hs)
    wwt = np.zeros((ws, wp), np.float32)
    wwt[:, :w] = _bilinear_matrix(w, ws).T
    return wh, wwt


def _seg_kernel(cw_ref, cb_ref, x_ref, wh_ref, wwt_ref, o_ref, a_ref, *, cin, th):
    """One (batch, out-channel, row-tile) grid step.

    cw_ref  : (Cout, Cin)      SMEM   1x1-conv weights
    cb_ref  : (Cout,)          SMEM   1x1-conv bias
    x_ref   : (1, Cin, Hs, Ws) VMEM   stride-2 subsampled input (per batch elem)
    wh_ref  : (Hp, Hs)         VMEM   row-interp operator (resident, const idx)
    wwt_ref : (Ws, Wp)         VMEM   lane-padded column-interp operator (resident)
    o_ref   : (1, 1, TH, Wp)   VMEM   output row tile for this (b, o)
    a_ref   : (Hs, Wp)         VMEM   scratch: channel-mixed + column-interpolated
                                      rows, computed once per (b, o) at row-tile 0
    """
    o = pl.program_id(1)
    r = pl.program_id(2)

    @pl.when(r == 0)
    def _():
        # (a) 1x1-conv channel mix for output channel `o` (Cin fmas on the VPU;
        #     ~0.2% of total MACs, scalars come from SMEM).
        mix = x_ref[0, 0] * cw_ref[o, 0]
        for c in range(1, cin):
            mix = mix + x_ref[0, c] * cw_ref[o, c]
        # (b) column interp on the MXU, once per (batch, output channel).
        a_ref[...] = jnp.dot(mix, wwt_ref[...],
                             preferred_element_type=jnp.float32)

    # (c) row interp for this output row tile: one (TH, Hs) @ (Hs, Wp) matmul.
    row0 = pl.multiple_of(r * th, 8)
    rows = jnp.dot(wh_ref[pl.ds(row0, th), :], a_ref[...],
                   preferred_element_type=jnp.float32)
    o_ref[0, 0] = (rows + cb_ref[o]).astype(o_ref.dtype)


def segmentation_wrapper_forward(x, conv_w, conv_b, *, row_tile=None):
    """x: (N, Cin, H, W) f32, conv_w: (Cout, Cin), conv_b: (Cout,) -> (N, Cout, H, W)."""
    n, cin, h, w = x.shape
    cout = conv_w.shape[0]
    hs, ws = (h + 1) // 2, (w + 1) // 2      # stride-2 head output size (ceil)

    wp = _ceil_to(w, 128)                    # lane-padded output width
    th = _ceil_to(row_tile if row_tile is not None else min(h, 256), 8)
    hp = _ceil_to(h, th)                     # row-padded output height
    n_row_tiles = hp // th

    wh_np, wwt_np = _interp_operators(h, hs, w, ws, hp, wp)
    wh = jnp.asarray(wh_np)
    wwt = jnp.asarray(wwt_np)

    # Stride-2 sampling of the synthetic head (cheap slice; no zero-fold).
    xs = x[:, :, ::2, ::2]                   # (N, Cin, Hs, Ws)

    # Explicit scoped-VMEM budget from the (layout-padded) working set.
    est_bytes = 4 * (
        2 * cin * _ceil_to(hs, 8) * _ceil_to(ws, 128)   # x block (double buffered)
        + 2 * hp * _ceil_to(hs, 128)                    # Wh (resident)
        + 2 * _ceil_to(ws, 8) * wp                      # Ww^T (resident)
        + 2 * th * wp                                   # output tile
        + _ceil_to(hs, 8) * wp)                         # scratch
    vmem_limit = int(min(max(est_bytes + (4 << 20), 16 << 20), 48 << 20))

    kernel = functools.partial(_seg_kernel, cin=cin, th=th)

    out = pl.pallas_call(
        kernel,
        out_shape=jax.ShapeDtypeStruct((n, cout, hp, wp), jnp.float32),
        grid=(n, cout, n_row_tiles),
        in_specs=[
            pl.BlockSpec(memory_space=pltpu.MemorySpace.SMEM),             # conv_w
            pl.BlockSpec(memory_space=pltpu.MemorySpace.SMEM),             # conv_b
            pl.BlockSpec((1, cin, hs, ws), lambda b, o, r: (b, 0, 0, 0)),  # xs slab
            pl.BlockSpec((hp, hs), lambda b, o, r: (0, 0)),                # Wh
            pl.BlockSpec((ws, wp), lambda b, o, r: (0, 0)),                # Ww^T
        ],
        out_specs=pl.BlockSpec((1, 1, th, wp), lambda b, o, r: (b, o, r, 0)),
        scratch_shapes=[pltpu.VMEM((hs, wp), jnp.float32)],
        compiler_params=pltpu.CompilerParams(
            dimension_semantics=("parallel", "parallel", "arbitrary"),
            vmem_limit_bytes=vmem_limit),
    )(conv_w.astype(jnp.float32), conv_b.astype(jnp.float32), xs, wh, wwt)

    return out[:, :, :h, :w]


def _reference_forward(x, conv_w, conv_b):
    """Pure-JAX reference of the same semantics (conv1x1 stride2 -> bilinear up)."""
    prec = jax.lax.Precision.HIGHEST
    xs = x[:, :, ::2, ::2]
    y = jnp.einsum('oc,nchw->nohw', conv_w, xs, precision=prec) \
        + conv_b[None, :, None, None]
    h, w = x.shape[-2:]
    hs, ws = xs.shape[-2:]
    wh = jnp.asarray(_bilinear_matrix(h, hs))
    ww = jnp.asarray(_bilinear_matrix(w, ws))
    t = jnp.einsum('Hh,nohw->noHw', wh, y, precision=prec)
    return jnp.einsum('noHw,Ww->noHW', t, ww, precision=prec)


if __name__ == "__main__":
    key = jax.random.PRNGKey(0)
    kx, kw, kb = jax.random.split(key, 3)

    N, Cin, H, W, Cout = 2, 4, 16, 16, 8
    x = jax.random.normal(kx, (N, Cin, H, W), dtype=jnp.float32)
    conv_w = 0.1 * jax.random.normal(kw, (Cout, Cin), dtype=jnp.float32)
    conv_b = 0.1 * jax.random.normal(kb, (Cout,), dtype=jnp.float32)

    # 1) default tiling
    out = jax.block_until_ready(segmentation_wrapper_forward(x, conv_w, conv_b))
    ref = _reference_forward(x, conv_w, conv_b)
    assert out.shape == (N, Cout, H, W)
    np.testing.assert_allclose(np.asarray(out), np.asarray(ref),
                               rtol=1e-4, atol=1e-4)

    # 2) forced multi-row-tile path (exercises per-(b,o) scratch reuse across tiles)
    out2 = jax.block_until_ready(
        segmentation_wrapper_forward(x, conv_w, conv_b, row_tile=8))
    np.testing.assert_allclose(np.asarray(out2), np.asarray(ref),
                               rtol=1e-4, atol=1e-4)

    # 3) odd spatial size (head output = ceil(H/2) x ceil(W/2); lane padding path)
    x3 = jax.random.normal(kx, (1, 3, 15, 15), dtype=jnp.float32)
    w3 = 0.1 * jax.random.normal(kw, (5, 3), dtype=jnp.float32)
    b3 = 0.1 * jax.random.normal(kb, (5,), dtype=jnp.float32)
    out3 = jax.block_until_ready(segmentation_wrapper_forward(x3, w3, b3))
    np.testing.assert_allclose(np.asarray(out3),
                               np.asarray(_reference_forward(x3, w3, b3)),
                               rtol=1e-4, atol=1e-4)

    print("KERNEL_OK")
</pallas_src>

<mosaic_0001>
module attributes {stable_mosaic.version = 11 : i64} {
  func.func @_seg_kernel(%arg0: i32, %arg1: i32, %arg2: i32, %arg3: memref<8x4xf32, #tpu.memory_space<smem>>, %arg4: memref<8xf32, #tpu.memory_space<smem>>, %arg5: memref<1x4x8x8xf32, #tpu.memory_space<vmem>>, %arg6: memref<16x8xf32, #tpu.memory_space<vmem>>, %arg7: memref<8x128xf32, #tpu.memory_space<vmem>>, %arg8: memref<1x1x16x128xf32, #tpu.memory_space<vmem>>, %arg9: memref<8x128xf32, #tpu.memory_space<vmem>>) attributes {dimension_semantics = [#tpu.dimension_semantics<parallel>, #tpu.dimension_semantics<parallel>, #tpu.dimension_semantics<arbitrary>], iteration_bounds = array<i64: 2, 8, 1>, scalar_prefetch = 0 : i64, scratch_operands = 1 : i64, tpu.core_type = #tpu.core_type<tc>, window_params = [{transform_indices = @transform_0, window_bounds = array<i64: 8, 4>}, {transform_indices = @transform_1, window_bounds = array<i64: 8>}, {transform_indices = @transform_2, window_bounds = array<i64: 1, 4, 8, 8>}, {pipeline_mode = #tpu.pipeline_mode<synchronous>, transform_indices = @transform_3, window_bounds = array<i64: 16, 8>}, {pipeline_mode = #tpu.pipeline_mode<synchronous>, transform_indices = @transform_4, window_bounds = array<i64: 8, 128>}, {transform_indices = @transform_5, window_bounds = array<i64: 1, 1, 16, 128>}]} {
    %c0_i32 = arith.constant 0 : i32
    %0 = arith.cmpi eq, %arg2, %c0_i32 : i32
    %1 = arith.extui %0 : i1 to i32
    %c0_i32_0 = arith.constant 0 : i32
    %2 = arith.cmpi ne, %1, %c0_i32_0 : i32
    scf.if %2 {
      %c0_7 = arith.constant 0 : index
      %c0_8 = arith.constant 0 : index
      %c0_9 = arith.constant 0 : index
      %c0_10 = arith.constant 0 : index
      %16 = vector.load %arg5[%c0_7, %c0_8, %c0_9, %c0_10] : memref<1x4x8x8xf32, #tpu.memory_space<vmem>>, vector<1x1x8x8xf32>
      %17 = vector.shape_cast %16 : vector<1x1x8x8xf32> to vector<8x8xf32>
      %18 = arith.index_cast %arg1 : i32 to index
      %c0_11 = arith.constant 0 : index
      %19 = memref.load %arg3[%18, %c0_11] : memref<8x4xf32, #tpu.memory_space<smem>>
      %20 = vector.broadcast %19 : f32 to vector<8x8xf32>
      %21 = arith.mulf %17, %20 : vector<8x8xf32>
      %c0_12 = arith.constant 0 : index
      %c1 = arith.constant 1 : index
      %c0_13 = arith.constant 0 : index
      %c0_14 = arith.constant 0 : index
      %22 = vector.load %arg5[%c0_12, %c1, %c0_13, %c0_14] : memref<1x4x8x8xf32, #tpu.memory_space<vmem>>, vector<1x1x8x8xf32>
      %23 = vector.shape_cast %22 : vector<1x1x8x8xf32> to vector<8x8xf32>
      %24 = arith.index_cast %arg1 : i32 to index
      %c1_15 = arith.constant 1 : index
      %25 = memref.load %arg3[%24, %c1_15] : memref<8x4xf32, #tpu.memory_space<smem>>
      %26 = vector.broadcast %25 : f32 to vector<8x8xf32>
      %27 = arith.mulf %23, %26 : vector<8x8xf32>
      %28 = arith.addf %21, %27 : vector<8x8xf32>
      %c0_16 = arith.constant 0 : index
      %c2 = arith.constant 2 : index
      %c0_17 = arith.constant 0 : index
      %c0_18 = arith.constant 0 : index
      %29 = vector.load %arg5[%c0_16, %c2, %c0_17, %c0_18] : memref<1x4x8x8xf32, #tpu.memory_space<vmem>>, vector<1x1x8x8xf32>
      %30 = vector.shape_cast %29 : vector<1x1x8x8xf32> to vector<8x8xf32>
      %31 = arith.index_cast %arg1 : i32 to index
      %c2_19 = arith.constant 2 : index
      %32 = memref.load %arg3[%31, %c2_19] : memref<8x4xf32, #tpu.memory_space<smem>>
      %33 = vector.broadcast %32 : f32 to vector<8x8xf32>
      %34 = arith.mulf %30, %33 : vector<8x8xf32>
      %35 = arith.addf %28, %34 : vector<8x8xf32>
      %c0_20 = arith.constant 0 : index
      %c3 = arith.constant 3 : index
      %c0_21 = arith.constant 0 : index
      %c0_22 = arith.constant 0 : index
      %36 = vector.load %arg5[%c0_20, %c3, %c0_21, %c0_22] : memref<1x4x8x8xf32, #tpu.memory_space<vmem>>, vector<1x1x8x8xf32>
      %37 = vector.shape_cast %36 : vector<1x1x8x8xf32> to vector<8x8xf32>
      %38 = arith.index_cast %arg1 : i32 to index
      %c3_23 = arith.constant 3 : index
      %39 = memref.load %arg3[%38, %c3_23] : memref<8x4xf32, #tpu.memory_space<smem>>
      %40 = vector.broadcast %39 : f32 to vector<8x8xf32>
      %41 = arith.mulf %37, %40 : vector<8x8xf32>
      %42 = arith.addf %35, %41 : vector<8x8xf32>
      %c0_24 = arith.constant 0 : index
      %c0_25 = arith.constant 0 : index
      %43 = vector.load %arg7[%c0_24, %c0_25] : memref<8x128xf32, #tpu.memory_space<vmem>>, vector<8x128xf32>
      %cst_26 = arith.constant dense<0.000000e+00> : vector<8x128xf32>
      %44 = tpu.matmul %42, %43, %cst_26 {dimension_numbers = #tpu.dot_dimension_numbers<[1], [0], [0], [1], [0, 0, 1, 1], [], []>} : vector<8x8xf32>, vector<8x128xf32>, vector<8x128xf32> -> vector<8x128xf32>
      %c0_27 = arith.constant 0 : index
      %c0_28 = arith.constant 0 : index
      %45 = vector.load %arg9[%c0_27, %c0_28] : memref<8x128xf32, #tpu.memory_space<vmem>>, vector<8x128xf32>
      tpu.vector_store %arg9[%c0_27, %c0_28], %44 {strides = array<i32>} : memref<8x128xf32, #tpu.memory_space<vmem>>, vector<8x128xf32>,
    } else {
    }
    %c16_i32 = arith.constant 16 : i32
    %3 = arith.muli %arg2, %c16_i32 : i32
    %4 = tpu.assume_multiple %3, 8 : i32
    %5 = arith.index_cast %4 : i32 to index
    %c0 = arith.constant 0 : index
    %6 = vector.load %arg6[%5, %c0] : memref<16x8xf32, #tpu.memory_space<vmem>>, vector<16x8xf32>
    %c0_1 = arith.constant 0 : index
    %c0_2 = arith.constant 0 : index
    %7 = vector.load %arg9[%c0_1, %c0_2] : memref<8x128xf32, #tpu.memory_space<vmem>>, vector<8x128xf32>
    %cst = arith.constant dense<0.000000e+00> : vector<16x128xf32>
    %8 = tpu.matmul %6, %7, %cst {dimension_numbers = #tpu.dot_dimension_numbers<[1], [0], [0], [1], [0, 0, 1, 1], [], []>} : vector<16x8xf32>, vector<8x128xf32>, vector<16x128xf32> -> vector<16x128xf32>
    %9 = arith.index_cast %arg1 : i32 to index
    %10 = memref.load %arg4[%9] : memref<8xf32, #tpu.memory_space<smem>>
    %11 = vector.broadcast %10 : f32 to vector<16x128xf32>
    %12 = arith.addf %8, %11 : vector<16x128xf32>
    %c0_3 = arith.constant 0 : index
    %c0_4 = arith.constant 0 : index
    %c0_5 = arith.constant 0 : index
    %c0_6 = arith.constant 0 : index
    %13 = vector.load %arg8[%c0_3, %c0_4, %c0_5, %c0_6] : memref<1x1x16x128xf32, #tpu.memory_space<vmem>>, vector<1x1x16x128xf32>
    %14 = vector.shape_cast %13 : vector<1x1x16x128xf32> to vector<16x128xf32>
    %15 = vector.shape_cast %12 : vector<16x128xf32> to vector<1x1x16x128xf32>
    tpu.vector_store %arg8[%c0_3, %c0_4, %c0_5, %c0_6], %15 {strides = array<i32>} : memref<1x1x16x128xf32, #tpu.memory_space<vmem>>, vector<1x1x16x128xf32>,
    return
  }
  func.func @transform_0(%arg0: i32, %arg1: i32, %arg2: i32) -> (i32, i32) {
    %c0_i32 = arith.constant 0 : i32
    %c0_i32_0 = arith.constant 0 : i32
    %c0_i32_1 = arith.constant 0 : i32
    return %c0_i32, %c0_i32_0 : i32, i32
  }
  func.func @transform_1(%arg0: i32, %arg1: i32, %arg2: i32) -> i32 {
    %c0_i32 = arith.constant 0 : i32
    %c0_i32_0 = arith.constant 0 : i32
    return %c0_i32 : i32
  }
  func.func @transform_2(%arg0: i32, %arg1: i32, %arg2: i32) -> (i32, i32, i32, i32) {
    %c0_i32 = arith.constant 0 : i32
    %c0_i32_0 = arith.constant 0 : i32
    %c0_i32_1 = arith.constant 0 : i32
    %c0_i32_2 = arith.constant 0 : i32
    return %arg0, %c0_i32, %c0_i32_0, %c0_i32_1 : i32, i32, i32, i32
  }
  func.func @transform_3(%arg0: i32, %arg1: i32, %arg2: i32) -> (i32, i32) {
    %c0_i32 = arith.constant 0 : i32
    %c0_i32_0 = arith.constant 0 : i32
    %c0_i32_1 = arith.constant 0 : i32
    return %c0_i32, %c0_i32_0 : i32, i32
  }
  func.func @transform_4(%arg0: i32, %arg1: i32, %arg2: i32) -> (i32, i32) {
    %c0_i32 = arith.constant 0 : i32
    %c0_i32_0 = arith.constant 0 : i32
    %c0_i32_1 = arith.constant 0 : i32
    return %c0_i32, %c0_i32_0 : i32, i32
  }
  func.func @transform_5(%arg0: i32, %arg1: i32, %arg2: i32) -> (i32, i32, i32, i32) {
    %c0_i32 = arith.constant 0 : i32
    %c0_i32_0 = arith.constant 0 : i32
    return %arg0, %arg1, %arg2, %c0_i32 : i32, i32, i32, i32
  }
}

</mosaic_0001>

<bundles_post_ra>
// kernel: tpu_custom_call.1
= control target key start
LH: loop header
LB: loop body
LE: loop exit
PB: predicated region body
PF: predicated region fallthrough
CT: control target
= control target key end

     0   :  { %s1128_s0 = inlined_call_operand.vmem [shape: f32[8,4], index: 0, kind: input, shape index: {}]   ;;  %s1129_s1 = inlined_call_operand.vmem [shape: f32[8], index: 1, kind: input, shape index: {}]   ;;  %s1130_s2 = inlined_call_operand.hbm [shape: f32[2,4,8,8], index: 2, kind: input, shape index: {}]   ;;  %s1131_s3 = inlined_call_operand.vmem [shape: f32[16,8], index: 3, kind: input, shape index: {}]   ;;  %s1132_s4 = inlined_call_operand.vmem [shape: f32[8,128], index: 4, kind: input, shape index: {}]   ;;  %s1133_s5 = inlined_call_operand.hbm [shape: f32[2,8,16,128], index: 5, kind: output, shape index: {}]  }
   0x1   :  { %1143 = sst [smem:[#allocation21_spill]] %s1128_s0 }
   0x2   :  { %1144 = sst [smem:[#allocation22_spill]] %s1129_s1 }
   0x3   :  { %1145 = sst [smem:[#allocation23_spill]] %s1133_s5 }
   0x4   :  { %10 = vsyncpa [#allocation6], 0 }
   0x5   :  { %11 = vsyncpa [#allocation8], 0 }
   0x6   :  { %12 = vsyncpa [#allocation4], 0 }
   0x7   :  { %14 = vsyncpa [#allocation4 + $0x1], 0 }
   0x8   :  { %15 = vsyncpa [#allocation5], 0 }
   0x9   :  { %17 = vsyncpa [#allocation5 + $0x1], 0  ;;  %s911_s18 = smov 0   ;;  %s913_s19 = smov 0  }
   0xa   :  { %s915_s20 = smov 0   ;;  %s917_s21 = smov 0  }
   0xb   :  { %s919_s22 = smov 0   ;;  %s921_s23 = smov 0  }
   0xc   :  { %s923_s24 = smov 0   ;;  %s925_s25 = smov 0  }
   0xd   :  { %s927_s26 = smov 0   ;;  %s929_s27 = smov 0  }
   0xe   :  { %s931_s28 = smov 0  }
   0xf LB: > { %1146 = sst [smem:[#allocation15_spill]] %s833_s18  ;;  %s527_s29 = sadd.s32 4294967295, %s873_s28   ;;  %s873_s28 = sphi %s931_s28, %s23_s28   ;;  %s869_s27 = sphi %s929_s27, %s1178_s27   ;;  %s865_s26 = sphi %s927_s26, %s1177_s26   ;;  %s861_s25 = sphi %s925_s25, %s1176_s25   ;;  %s857_s24 = sphi %s923_s24, %s1168_s24   ;;  %s853_s23 = sphi %s921_s23, %s1175_s23   ;;  %s849_s22 = sphi %s919_s22, %s1174_s22   ;;  %s845_s21 = sphi %s917_s21, %s1173_s21   ;;  %s841_s20 = sphi %s915_s20, %s1172_s20   ;;  %s837_s19 = sphi %s913_s19, %s1171_s19   ;;  %s833_s18 = sphi %s911_s18, %s1170_s18  }
  0x10   : > { %1147 = sst [smem:[#allocation16_spill]] %s865_s26  ;;  %s528_s30 = sadd.s32 4294967294, %s873_s28  }
  0x11   : > { %1148 = sst [smem:[#allocation17_spill]] %s873_s28  ;;  %p98_p0 = scmp.ne.s32.totalorder %s853_s23, %s849_s22 }
  0x12   : > { %p99_p1 = scmp.eq.s32.totalorder %s873_s28, 0  ;;  %p104_p2 = scmp.ne.s32.totalorder %s849_s22, %s845_s21 }
  0x13   : > { %p971_p3 = scmp.eq.s32.totalorder %s527_s29, 0  ;;  %p173_p5 = scmp.ne.s32.totalorder %s841_s20, %s837_s19 }
  0x14   : > { %p976_p4 = por %p99_p1, %p98_p0  ;;  %p174_p7 = scmp.eq.s32.totalorder %s527_s29, 15 }
  0x15   : > { %p984_p6 = por %p971_p3, %p104_p2  ;;  %p179_p8 = scmp.ne.s32.totalorder %s837_s19, %s833_s18 }
  0x16   : > { %p180_p9 = scmp.eq.s32.totalorder %s528_s30, 15  ;;  %p990_p10 = por %p174_p7, %p173_p5 }
  0x17   : > { %p529_p11 = scmp.ge.s32.totalorder %s873_s28, 1  ;;  %p187_p13 = scmp.lt.s32.totalorder %s873_s28, 17 }
  0x18   : > { %s1152_s11 = scalar_select %p990_p10, 1, 0 }
  0x19   : > { %p995_p12 = por %p180_p9, %p179_p8  ;;  %s1156_s0 = sld [smem:[#allocation21_spill]] }
  0x1a   : > { %1153 = sst [smem:[#allocation18_spill]] %s1152_s11  ;;  %p1003_p0 = pnand %p529_p11, %p187_p13 }
  0x1b   : > { %s1154_s12 = scalar_select %p995_p12, 1, 0 }
  0x1c   : > { %p568_p1 = pneg %p1003_p0  ;;  %p585_p2 = scmp.lt.s32.totalorder %s873_s28, 16 }
  0x1d   : > { %1155 = sst [smem:[#allocation19_spill]] %s1154_s12  ;;  %s875_s13 = smov [#allocation3]  }
  0x1e   : > { %s1158_s1 = sld [smem:[#allocation22_spill]]  ;;  %p569_p5 = pnand %p568_p1, %p971_p3 }
  0x1f   : > { %s199_s15 = sshll.u32 %s1156_s0, 4  ;;  %p1017_p7 = pnand %p585_p2, %p976_p4  ;;  %s200_s15 = int_to_ptr.vmem [resolvable:$true] %s199_s15 }
  0x20   : > { %571 = dma.vmem_to_smem (!%p569_p5), %s200_s15, 128, %s875_s13, [#allocation6]  }
  0x21   : > { %s876_s14 = smov [#allocation7]   ;;  %s38_s8 = sadd.s32 1, %s865_s26 }
  0x22   : > { %p40_p8 = scmp.ge.s32.totalorder %s38_s8, 8  ;;  %s42_s6 = sadd.s32 1, %s869_s27 }
  0x23   : > { %s226_s0 = sand.u32 1, %s853_s23   ;;  %s554_s17 = sshll.u32 %s869_s27, 5 }
  0x24   : > { %s209_s29 = sshll.u32 %s1158_s1, 4  ;;  %s1180_s8 = smov (%p40_p8, %s38_s8), 0  ;;  %s210_s29 = int_to_ptr.vmem [resolvable:$true] %s209_s29 }
  0x25   : > { %574 = dma.vmem_to_smem (!%p569_p5), %s210_s29, 16, %s876_s14, [#allocation8]  }
  0x26   : > { %1160 = sst [smem:[#allocation20_spill]] %s1180_s8  ;;  %s1182_s6 = smov (!%p40_p8, %s42_s6), %s869_s27 }
  0x27   : > { %s157_s9 = ssub.s32 %s865_s26, %s1180_s8  ;;  %p44_p4 = scmp.ge.s32.totalorder %s1182_s6, 2 }
  0x28   : > { %s533_s21 = sshll.u32 %s226_s0, 5  ;;  %s235_s29 = scalar_lea.hbm %s1130_s2, %s554_s17 }
  0x29   : > { %s1184_s6 = smov (%p44_p4, %s1182_s6), 0  ;;  %s236_s14 = sshll.u32 %s235_s29, 4  ;;  %s237_s14 = int_to_ptr.hbm [resolvable:$true] %s236_s14 }
  0x2a   : > { %s230_s1 = scalar_lea.vmem [#allocation9], %s533_s21  ;;  %s88_s18 = ssub.s32 %s869_s27, %s1184_s6 }
  0x2b   : > { %s238_s12 = sshll.u32 %s230_s1, 4  ;;  %p89_p9 = scmp.eq.s32.totalorder %s88_s18, 0  ;;  %s239_s12 = int_to_ptr.vmem [resolvable:$true] %s238_s12 }
  0x2c   : > { %s158_s28 = sor.u32 %s157_s9, %s88_s18  ;;  %s1161_s8 = sadd.s32 1, %s853_s23 }
  0x2d   : > { %p161_p11 = scmp.eq.s32.totalorder %s158_s28, 0  ;;  %s1162_s11 = sadd.s32 1, %s841_s20 }
  0x2e   : > { %s1040_s26 = scalar_select %p89_p9, %s853_s23, %s1161_s8  }
  0x2f   : > { %s1045_s5 = scalar_select %p161_p11, %s841_s20, %s1162_s11  }
  0x30   : > { %s227_s17 = scalar_lea.sflag [#allocation4], %s226_s0  ;;  %s877_s15 = smov 128  }
  0x31   : > { %s878_s13 = smov 8   ;;  %250 = sbr.rel (%p1003_p0) target bundleno = 345 (0x159), region = 40 }
  0x32   : > { %578 = dma.hbm_to_vmem [thread:$0]  (!%p1017_p7), %s237_s14, 512, %s239_s12, %s227_s17, %s877_s15, %s877_s15, %s878_s13  }
  0x36   : > { %816 = dma.done.wait (%p971_p3), [#allocation6], 128  }
  0x37   : > { %818 = vsyncadd (%p971_p3), [#allocation6], 4294967168 }
  0x38   : > { %820 = dma.done.wait (%p971_p3), [#allocation8], 16  }
  0x39   : > { %822 = vsyncadd (%p971_p3), [#allocation8], 4294967280  ;;  %s262_s0 = sand.u32 1, %s849_s22  }
  0x3a   : > { %s539_s1 = sshll.u32 %s262_s0, 5  ;;  %s263_s18 = scalar_lea.sflag [#allocation4], %s262_s0 }
  0x3b   : > { %s266_s28 = scalar_lea.vmem [#allocation9], %s539_s1 }
  0x3c   : > { %824 = dma.done.wait (%p984_p6), %s263_s18, 512  }
  0x3d   : > { %826 = vsyncadd (%p984_p6), %s263_s18, 4294966784 }
  0x3e   : > { %272 = sfence }
  0x3f   : > { %v326_v0 = vld [vmem:[%s1132_s4] sm:$0xff]  ;;  %s541_s12 = sshll.u32 %s857_s24, 7  ;;  %v300_v1 = vld [vmem:[%s266_s28] sm:$0xff]  ;;  %v542_v2 = vld [vmem:[%s266_s28 + $0x8] sm:$0xff]  ;;  %vm327_vm0 = vcmask 64512   ;;  %s357_s0 = sld [smem:[#allocation7 + %s857_s24]] }
  0x40   : > { %346 = vmatpush.msra.mxu0 %v326_v0  ;;  %s302_s7 = sld [smem:[#allocation3 + %s541_s12]]  ;;  %s307_s16 = sadd.s32 1, %s541_s12  ;;  %v543_v4 = vld [vmem:[%s266_s28 + $0x10] sm:$0xff]  ;;  %v544_v7 = vld [vmem:[%s266_s28 + $0x18] sm:$0xff]  ;;  %v355_v16 = vld [vmem:[%s1131_s3 + $0x8] sm:$0xff] }
  0x41   : > { %s308_s30 = sld [smem:[#allocation3 + %s307_s16]]  ;;  %s314_s9 = sadd.s32 2, %s541_s12  ;;  %v354_v17 = vld [vmem:[%s1131_s3] sm:$0xff] }
  0x42   : > { %s315_s21 = sld [smem:[#allocation3 + %s314_s9]]  ;;  %s321_s29 = sadd.s32 3, %s541_s12 }
  0x43   : > { %s322_s14 = sld [smem:[#allocation3 + %s321_s29]]  ;;  %s549_s1 = sshll.u32 %s857_s24, 1 }
  0x44   : > { %s550_s18 = sshll.u32 %s861_s25, 4  ;;  %s292_s28 = sand.u32 1, %s837_s19  }
  0x45   : > { %s405_s8 = sadd.s32 %s550_s18, %s549_s1  ;;  %s540_s11 = sshll.u32 %s292_s28, 4  ;;  %v358_v19 = vstv %s357_s0 }
  0x46   : > { %v303_v3 = vstv %s302_s7  ;;  %s551_s12 = sshll.u32 %s405_s8, 3  ;;  %s294_s29 = scalar_lea.vmem [#allocation10], %s540_s11 }
  0x47   : > { %v304_v5 = vmul.f32 %v303_v3, %v300_v1  ;;  %v309_v6 = vstv %s308_s30  ;;  %s1163_s30 = sld [smem:[#allocation23_spill]]  ;;  %s392_s24 = scalar_lea.sflag [#allocation5], %s292_s28 }
  0x48   : > { %v310_v8 = vmul.f32 %v542_v2, %v309_v6  ;;  %v316_v9 = vstv %s315_s21 }
  0x49   : > { %v317_v10 = vmul.f32 %v543_v4, %v316_v9  ;;  %v323_v11 = vstv %s322_s14  ;;  %s408_s14 = sshll.u32 %s294_s29, 4  ;;  %s409_s14 = int_to_ptr.vmem [resolvable:$true] %s408_s14 }
  0x4a   : > { %v311_v12 = vadd.f32 %v310_v8, %v304_v5  ;;  %v324_v13 = vmul.f32 %v544_v7, %v323_v11 }
  0x4c   : > { %v318_v14 = vadd.f32 %v317_v10, %v311_v12 }
  0x4d   : > { %s407_s21 = scalar_lea.hbm %s1163_s30, %s551_s12  ;;  %s763_s0 = scalar_lea.hbm %s1163_s30, 256 }
  0x4e   : > { %v325_v15 = vadd.f32 %v324_v13, %v318_v14  ;;  %s410_s10 = sshll.u32 %s407_s21, 4  ;;  %s411_s10 = int_to_ptr.hbm [resolvable:$true] %s410_s10 }
  0x4f   : > { %s757_s25 = sshra.s32 %s411_s10, 4  ;;  %s758_s25 = int_to_ptr.hbm [resolvable:$true] %s757_s25 }
  0x50   : > { %545 = vmatmul.msk.f32.vlgmr.msra.gmra.mxu0 %vm327_vm0, %v325_v15  ;;  %s759_s17 = scalar_lea.hbm %s758_s25, 16  ;;  %p764_p0 = scmp.lt.s32.totalorder %s758_s25, %s1163_s30 }
  0x51   : > { %p760_p3 = scmp.ne.s32.totalorder %s758_s25, %s759_s17  ;;  %p765_p1 = scmp.lt.s32.totalorder %s763_s0, %s759_s17 }
  0x53   : > { %p761_p6 = pnand %p760_p3, %p990_p10  ;;  %p766_p2 = por %p765_p1, %p764_p0 }
  0x55   : > { %p762_p13 = pneg %p761_p6 }
  0x57   : > { %p767_p5 = pnand %p766_p2, %p762_p13 }
  0xcd   : > { %v348_v18 = vpop.f32.mrf.mxu0 }
  0xce   : > { %381 = vmatpush.msra.mxu1 %v348_v18  ;;  %555 = vmatpush.msra.mxu2 %v348_v18 }
  0xcf   : > { %547 = vmatmul.msk.f32.vlgmr.msra.gmra.mxu2 %vm327_vm0, %v355_v16  ;;  %546 = vmatmul.msk.f32.vlgmr.msra.gmra.mxu1 %vm327_vm0, %v354_v17 }
 0x14c   : > { %v383_v20 = vpop.f32.mrf.mxu1 }
 0x14d   : > { %v384_v21 = vadd.f32 %v383_v20, %v358_v19 }
 0x14f   : > { %389 = vst [vmem:[%s294_s29] sm:$0xff] %v384_v21 }
 0x152   : > { %v386_v22 = vpop.f32.mrf.mxu2 }
 0x153   : > { %v387_v23 = vadd.f32 %v386_v22, %v358_v19 }
 0x155   : > { %390 = vst [vmem:[%s294_s29 + $0x8] sm:$0xff] %v387_v23 }
 0x156   : > { %770 = shalt.err (!%p767_p5)
}
 0x157   : > { %s879_s28 = smov 128   ;;  %s880_s8 = smov 8  }
 0x158   : > { %566 = dma.vmem_to_hbm [thread:$0]  (%p990_p10), %s409_s14, 256, %s411_s10, %s392_s24, %s879_s28, %s879_s28, %s880_s8  }
 0x159 PF: > { %s1165_s11 = sld [smem:[#allocation17_spill]] }
 0x15a   : > { %s1166_s12 = sld [smem:[#allocation15_spill]] }
 0x15f   : > { %p588_p7 = scmp.ge.s32.totalorder %s1165_s11, 2 }
 0x160   : > { %s425_s16 = sand.u32 1, %s1166_s12  }
 0x161   : > { %p580_p8 = pnand %p588_p7, %p995_p12  ;;  %s426_s21 = scalar_lea.sflag [#allocation5], %s425_s16 }
 0x163   : > { %p581_p4 = pneg %p580_p8 }
 0x165   : > { %828 = dma.done.wait (%p581_p4), %s426_s21, 256  }
 0x166   : > { %830 = vsyncadd (%p581_p4), %s426_s21, 4294967040  ;;  %s23_s28 = sadd.s32 1, %s1165_s11   ;;  %s1168_s24 = sld [smem:[#allocation16_spill]] }
 0x167   : > { %p20_p9 = scmp.ge.s32.totalorder %s23_s28, 18   ;;  %s1169_s9 = sld [smem:[#allocation20_spill]] }
 0x168   : > { %s1170_s18 = smov %s837_s19  ;;  %s1171_s19 = smov %s841_s20 }
 0x169   : > { %s1172_s20 = smov %s1045_s5  ;;  %s1173_s21 = smov %s849_s22 }
 0x16a   : > { %s1174_s22 = smov %s853_s23  ;;  %s1175_s23 = smov %s1040_s26 }
 0x16b   : > { %s1176_s25 = smov %s869_s27  ;;  %s1178_s27 = smov %s1184_s6 }
 0x16c   :  { %22 = sbr.rel (!%p20_p9) target bundleno = 15 (0xf), region = 102 }
 0x16d   : > { %s1177_s26 = smov %s1169_s9 }
 0x171   :  { %432 = vsyncpa [#allocation4], 1 }
 0x172   :  { %434 = vsyncpa [#allocation4 + $0x1], 1 }
 0x173   :  { %435 = vsyncpa [#allocation5], 1 }
 0x174   :  { %437 = vsyncpa [#allocation5 + $0x1], 1 }
 0x175   :  { %438 = vsyncpa [#allocation6], 1 }
 0x176   :  { %440 = vsyncpa [#allocation6 + $0x1], 1 }
 0x177   :  { %441 = vsyncpa [#allocation8], 1 }

</bundles_post_ra>
